<compile_context>
chip_gen: v7x
topology: tpu7x:2x2x1
jax: 0.10.0
libtpu: 0.0.40
codegen_flags: <defaults>
</compile_context>

<pallas_src>
import functools

import jax
import jax.numpy as jnp
import numpy as np
from jax.experimental import pallas as pl
from jax.experimental.pallas import tpu as pltpu

EPS = 1e-5  # nn.BatchNorm2d default eps

# Sized for the smallest VMEM generation (v7x: 64 MiB per TensorCore).
_VMEM_LIMIT = 48 * 1024 * 1024
_BLOCK_BUDGET = 28 * 1024 * 1024
_TILE_TARGET = 8192  # columns


def _round_up(a, b):
    return -(-a // b) * b


def _stats_kernel(p_ref, w_ref, ssum_ref, ssq_ref, *, hw, hwp, mp, tm):
    """Pass 1: conv matmul (discarded) + masked per-tile BN sum / sum-of-squares.

    p_ref:  [Kp, TM]      bf16  im2col patches (pixels on lanes)
    w_ref:  [C_out, Kp]   bf16  full weight, VMEM resident
    ssum_ref / ssq_ref: [1, C_out, 1] f32 per-tile partial statistics
    """
    y = jnp.dot(w_ref[...], p_ref[...], preferred_element_type=jnp.float32)
    col = jax.lax.broadcasted_iota(jnp.int32, (1, tm), 1) + pl.program_id(0) * tm
    # Valid columns: real (unpadded) pixels of each image, and inside the array
    # (the ragged last block may read stale VMEM beyond mp -> where(), not *).
    valid = ((col % hwp) < hw) & (col < mp)
    yv = jnp.where(valid, y, 0.0)
    ssum_ref[0, :, :] = jnp.sum(yv, axis=1, keepdims=True)
    ssq_ref[0, :, :] = jnp.sum(yv * yv, axis=1, keepdims=True)


def _conv_bn_kernel(p_ref, w_ref, scale_ref, shift_ref, o_ref):
    """Pass 2: recompute conv matmul + fused BN affine, lane-dense output.

    p_ref:  [Kp, TS] bf16   w_ref: [C_out, Kp] bf16
    scale_ref / shift_ref: [C_out, 1] f32
    o_ref:  [1, C_out, TS] f32
    """
    y = jnp.dot(w_ref[...], p_ref[...], preferred_element_type=jnp.float32)
    o_ref[0, :, :] = y * scale_ref[...] + shift_ref[...]


def downsample(x, w, b, gamma, beta, *, eps=EPS, tile_target=_TILE_TARGET):
    """x: [B, C_in, H, W] f32 (NCHW). w: [C_out, C_in, 3, 3]. Returns NCHW f32.

    `b` (conv bias) is accepted to mirror the PyTorch module but unused: with
    batch-statistic BatchNorm it cancels exactly in the mean subtraction.
    """
    del b
    B, C_in, H, W = x.shape
    C_out = w.shape[0]
    Ho = (H + 2 - 3) // 2 + 1
    Wo = (W + 2 - 3) // 2 + 1
    HW = Ho * Wo
    HWp = _round_up(HW, 128)       # per-batch spatial, lane aligned
    Mp = B * HWp                   # total (padded) pixel columns
    M_valid = B * HW               # real pixel count for the statistics
    K = C_in * 9
    Kp = _round_up(K, 16)          # bf16 (16,128)-tile aligned contraction dim

    # --- glue: bf16 from the start; strided 3x3 taps -> [Kp, B*HWp] patches ---
    xb = x.astype(jnp.bfloat16)
    xpad = jnp.pad(xb, ((0, 0), (0, 0), (1, 1), (1, 1)))
    taps = [xpad[:, :, kh:kh + 2 * Ho:2, kw:kw + 2 * Wo:2]      # [B, C_in, Ho, Wo]
            for kh in range(3) for kw in range(3)]
    t = jnp.stack(taps, axis=2)                                  # [B, C_in, 9, Ho, Wo]
    t = t.transpose(1, 2, 0, 3, 4).reshape(K, B, HW)             # K=(c,kh,kw), cols=(b,hw)
    t = jnp.pad(t, ((0, Kp - K), (0, 0), (0, HWp - HW)))         # zero K / spatial pad
    pT = t.reshape(Kp, Mp)
    w2 = jnp.pad(w.reshape(C_out, K).astype(jnp.bfloat16),       # same (c,kh,kw) K order
                 ((0, 0), (0, Kp - K)))

    # ---- pass 1 tile: bounded by VMEM (patch double-buffer + f32 y temporaries) ----
    per_col1 = 2 * (2 * Kp) + 3 * (4 * C_out)
    TM = min(tile_target, _BLOCK_BUDGET // per_col1, Mp)
    if Mp > 128:                                   # keep >= 2 steps for v7x megacore
        TM = min(TM, _round_up(-(-Mp // 2), 128))
    TM = max(128, (TM // 128) * 128)
    n1 = -(-Mp // TM)

    cost1 = pl.CostEstimate(
        flops=2 * Mp * Kp * C_out, transcendentals=0,
        bytes_accessed=Kp * Mp * 2 + C_out * Kp * 2 + 2 * n1 * C_out * 4)

    ssum, ssq = pl.pallas_call(
        functools.partial(_stats_kernel, hw=HW, hwp=HWp, mp=Mp, tm=TM),
        grid=(n1,),
        in_specs=[pl.BlockSpec((Kp, TM), lambda i: (0, i)),
                  pl.BlockSpec((C_out, Kp), lambda i: (0, 0))],
        out_specs=[pl.BlockSpec((1, C_out, 1), lambda i: (i, 0, 0)),
                   pl.BlockSpec((1, C_out, 1), lambda i: (i, 0, 0))],
        out_shape=(jax.ShapeDtypeStruct((n1, C_out, 1), jnp.float32),
                   jax.ShapeDtypeStruct((n1, C_out, 1), jnp.float32)),
        compiler_params=pltpu.CompilerParams(
            dimension_semantics=("parallel",), vmem_limit_bytes=_VMEM_LIMIT),
        cost_estimate=cost1,
    )(pT, w2)

    # ---- tiny cross-tile reduction + BN coefficients (negligible XLA work) ----
    mean = jnp.sum(ssum, axis=0) / M_valid                        # [C_out, 1]
    var = jnp.maximum(jnp.sum(ssq, axis=0) / M_valid - mean * mean, 0.0)
    inv = jax.lax.rsqrt(var + eps)
    scale = gamma.astype(jnp.float32).reshape(C_out, 1) * inv     # [C_out, 1]
    shift = beta.astype(jnp.float32).reshape(C_out, 1) - mean * scale

    # ---- pass 2 tile: must divide HWp and be a multiple of 128 ----
    per_col2 = 2 * (2 * Kp) + 2 * (4 * C_out) + 2 * (4 * C_out)
    ts_cap = max(128, min(tile_target, _BLOCK_BUDGET // per_col2))
    if B == 1 and HWp > 128:                      # keep >= 2 steps for v7x megacore
        ts_cap = min(ts_cap, HWp // 2)
    q = HWp // 128
    d_best = 1
    for d in range(1, q + 1):
        if q % d == 0 and 128 * d <= ts_cap:
            d_best = d
    TS = 128 * d_best
    n_s = HWp // TS

    cost2 = pl.CostEstimate(
        flops=2 * Mp * Kp * C_out, transcendentals=0,
        bytes_accessed=Kp * Mp * 2 + C_out * Kp * 2 + B * C_out * HWp * 4)

    out = pl.pallas_call(
        _conv_bn_kernel,
        grid=(B, n_s),
        in_specs=[pl.BlockSpec((Kp, TS), lambda bi, s: (0, bi * n_s + s)),
                  pl.BlockSpec((C_out, Kp), lambda bi, s: (0, 0)),
                  pl.BlockSpec((C_out, 1), lambda bi, s: (0, 0)),
                  pl.BlockSpec((C_out, 1), lambda bi, s: (0, 0))],
        out_specs=pl.BlockSpec((1, C_out, TS), lambda bi, s: (bi, 0, s)),
        out_shape=jax.ShapeDtypeStruct((B, C_out, HWp), jnp.float32),
        compiler_params=pltpu.CompilerParams(
            dimension_semantics=("parallel", "parallel"),
            vmem_limit_bytes=_VMEM_LIMIT),
        cost_estimate=cost2,
    )(pT, w2, scale, shift)

    # (B, C_out, HWp) -> NCHW; free reshape when HW is already lane aligned.
    if HWp != HW:
        out = out[:, :, :HW]
    return out.reshape(B, C_out, Ho, Wo)


if __name__ == "__main__":
    key = jax.random.PRNGKey(0)
    k1, k2, k3, k4, k5 = jax.random.split(key, 5)

    B, C_in, H, W = 2, 4, 16, 16
    C_out = 32

    x = jax.random.normal(k1, (B, C_in, H, W), jnp.float32)

    fan_in = C_in * 9
    bound = 1.0 / np.sqrt(fan_in)
    w = jax.random.uniform(k2, (C_out, C_in, 3, 3), jnp.float32, -bound, bound)
    b = jax.random.uniform(k3, (C_out,), jnp.float32, -bound, bound)
    gamma = jax.random.uniform(k4, (C_out,), jnp.float32, 0.5, 1.5)
    beta = jax.random.uniform(k5, (C_out,), jnp.float32, -0.5, 0.5)

    out = jax.block_until_ready(jax.jit(downsample)(x, w, b, gamma, beta))
    assert out.shape == (B, C_out, 8, 8)

    # Pure-JAX reference (conv + bias + training-mode batchnorm). The kernel feeds
    # the MXU bf16 operands (f32 accumulation), so the reference uses the same
    # bf16-rounded x/w; it keeps the conv bias, which the kernel drops because
    # batch-statistic BN cancels it exactly.
    xr = x.astype(jnp.bfloat16).astype(jnp.float32)
    wr = w.astype(jnp.bfloat16).astype(jnp.float32)
    y = jax.lax.conv_general_dilated(
        xr, wr, window_strides=(2, 2), padding=((1, 1), (1, 1)),
        dimension_numbers=("NCHW", "OIHW", "NCHW"))
    y = y + b[None, :, None, None]
    mean = y.mean(axis=(0, 2, 3), keepdims=True)
    var = ((y - mean) ** 2).mean(axis=(0, 2, 3), keepdims=True)
    ref = (y - mean) * jax.lax.rsqrt(var + EPS) \
        * gamma[None, :, None, None] + beta[None, :, None, None]

    np.testing.assert_allclose(np.asarray(out), np.asarray(ref), atol=2e-3, rtol=2e-3)
    print("KERNEL_OK")
</pallas_src>

<mosaic_0001>
module attributes {stable_mosaic.version = 11 : i64} {
  func.func @_stats_kernel(%arg0: i32, %arg1: memref<48x128xbf16, #tpu.memory_space<vmem>>, %arg2: memref<32x48xbf16, #tpu.memory_space<vmem>>, %arg3: memref<1x32x1xf32, #tpu.memory_space<vmem>>, %arg4: memref<1x32x1xf32, #tpu.memory_space<vmem>>) attributes {dimension_semantics = [#tpu.dimension_semantics<parallel>], iteration_bounds = array<i64: 2>, scalar_prefetch = 0 : i64, scratch_operands = 0 : i64, tpu.core_type = #tpu.core_type<tc>, window_params = [{transform_indices = @transform_0, window_bounds = array<i64: 48, 128>}, {pipeline_mode = #tpu.pipeline_mode<synchronous>, transform_indices = @transform_1, window_bounds = array<i64: 32, 48>}, {transform_indices = @transform_2, window_bounds = array<i64: 1, 32, 1>}, {transform_indices = @transform_3, window_bounds = array<i64: 1, 32, 1>}]} {
    %c0 = arith.constant 0 : index
    %c0_0 = arith.constant 0 : index
    %0 = vector.load %arg2[%c0, %c0_0] : memref<32x48xbf16, #tpu.memory_space<vmem>>, vector<32x48xbf16>
    %c0_1 = arith.constant 0 : index
    %c0_2 = arith.constant 0 : index
    %1 = vector.load %arg1[%c0_1, %c0_2] : memref<48x128xbf16, #tpu.memory_space<vmem>>, vector<48x128xbf16>
    %cst = arith.constant dense<0.000000e+00> : vector<32x128xf32>
    %2 = tpu.matmul %0, %1, %cst {dimension_numbers = #tpu.dot_dimension_numbers<[1], [0], [0], [1], [0, 0, 1, 1], [], []>} : vector<32x48xbf16>, vector<48x128xbf16>, vector<32x128xf32> -> vector<32x128xf32>
    %3 = tpu.iota {dimensions = array<i32: 1>} : vector<1x128xi32>
    %c128_i32 = arith.constant 128 : i32
    %4 = arith.muli %arg0, %c128_i32 : i32
    %5 = vector.broadcast %4 : i32 to vector<1x128xi32>
    %6 = arith.addi %3, %5 : vector<1x128xi32>
    %c128_i32_3 = arith.constant 128 : i32
    %c0_i32 = arith.constant 0 : i32
    %7 = arith.cmpi eq, %c128_i32_3, %c0_i32 : i32
    %c1_i32 = arith.constant 1 : i32
    %8 = arith.select %7, %c1_i32, %c128_i32_3 : i32
    %9 = vector.broadcast %8 : i32 to vector<1x128xi32>
    %10 = arith.remsi %6, %9 : vector<1x128xi32>
    %c0_i32_4 = arith.constant 0 : i32
    %11 = vector.broadcast %c0_i32_4 : i32 to vector<1x128xi32>
    %12 = arith.cmpi ne, %10, %11 : vector<1x128xi32>
    %c0_i32_5 = arith.constant 0 : i32
    %13 = vector.broadcast %c0_i32_5 : i32 to vector<1x128xi32>
    %14 = arith.cmpi slt, %10, %13 : vector<1x128xi32>
    %c0_i32_6 = arith.constant 0 : i32
    %15 = arith.cmpi slt, %8, %c0_i32_6 : i32
    %16 = vector.broadcast %15 : i1 to vector<1x128xi1>
    %17 = vector.broadcast %16 : vector<1x128xi1> to vector<1x128xi1>
    %18 = arith.xori %14, %17 : vector<1x128xi1>
    %19 = arith.andi %18, %12 : vector<1x128xi1>
    %20 = vector.broadcast %8 : i32 to vector<1x128xi32>
    %21 = arith.addi %10, %20 : vector<1x128xi32>
    %22 = arith.select %19, %21, %10 : vector<1x128xi1>, vector<1x128xi32>
    %c64_i32 = arith.constant 64 : i32
    %23 = vector.broadcast %c64_i32 : i32 to vector<1x128xi32>
    %24 = arith.cmpi slt, %22, %23 : vector<1x128xi32>
    %c256_i32 = arith.constant 256 : i32
    %25 = vector.broadcast %c256_i32 : i32 to vector<1x128xi32>
    %26 = arith.cmpi slt, %6, %25 : vector<1x128xi32>
    %27 = arith.andi %24, %26 : vector<1x128xi1>
    %cst_7 = arith.constant 0.000000e+00 : f32
    %28 = vector.shape_cast %27 : vector<1x128xi1> to vector<1x128xi1>
    %29 = vector.broadcast %28 : vector<1x128xi1> to vector<32x128xi1>
    %30 = vector.broadcast %cst_7 : f32 to vector<32x128xf32>
    %31 = arith.select %29, %2, %30 : vector<32x128xi1>, vector<32x128xf32>
    %cst_8 = arith.constant dense<0.000000e+00> : vector<32xf32>
    %32 = vector.multi_reduction <add>, %31, %cst_8 [1] : vector<32x128xf32> to vector<32xf32>
    %33 = vector.shape_cast %32 : vector<32xf32> to vector<32x1xf32>
    %c0_9 = arith.constant 0 : index
    %c0_10 = arith.constant 0 : index
    %c0_11 = arith.constant 0 : index
    %34 = vector.load %arg3[%c0_9, %c0_10, %c0_11] : memref<1x32x1xf32, #tpu.memory_space<vmem>>, vector<1x32x1xf32>
    %35 = vector.shape_cast %34 : vector<1x32x1xf32> to vector<32x1xf32>
    %36 = vector.shape_cast %33 : vector<32x1xf32> to vector<1x32x1xf32>
    tpu.vector_store %arg3[%c0_9, %c0_10, %c0_11], %36 {strides = array<i32>} : memref<1x32x1xf32, #tpu.memory_space<vmem>>, vector<1x32x1xf32>,
    %37 = arith.mulf %31, %31 : vector<32x128xf32>
    %cst_12 = arith.constant dense<0.000000e+00> : vector<32xf32>
    %38 = vector.multi_reduction <add>, %37, %cst_12 [1] : vector<32x128xf32> to vector<32xf32>
    %39 = vector.shape_cast %38 : vector<32xf32> to vector<32x1xf32>
    %c0_13 = arith.constant 0 : index
    %c0_14 = arith.constant 0 : index
    %c0_15 = arith.constant 0 : index
    %40 = vector.load %arg4[%c0_13, %c0_14, %c0_15] : memref<1x32x1xf32, #tpu.memory_space<vmem>>, vector<1x32x1xf32>
    %41 = vector.shape_cast %40 : vector<1x32x1xf32> to vector<32x1xf32>
    %42 = vector.shape_cast %39 : vector<32x1xf32> to vector<1x32x1xf32>
    tpu.vector_store %arg4[%c0_13, %c0_14, %c0_15], %42 {strides = array<i32>} : memref<1x32x1xf32, #tpu.memory_space<vmem>>, vector<1x32x1xf32>,
    return
  }
  func.func @transform_0(%arg0: i32) -> (i32, i32) {
    %c0_i32 = arith.constant 0 : i32
    %c0_i32_0 = arith.constant 0 : i32
    return %c0_i32, %arg0 : i32, i32
  }
  func.func @transform_1(%arg0: i32) -> (i32, i32) {
    %c0_i32 = arith.constant 0 : i32
    %c0_i32_0 = arith.constant 0 : i32
    %c0_i32_1 = arith.constant 0 : i32
    return %c0_i32, %c0_i32_0 : i32, i32
  }
  func.func @transform_2(%arg0: i32) -> (i32, i32, i32) {
    %c0_i32 = arith.constant 0 : i32
    %c0_i32_0 = arith.constant 0 : i32
    %c0_i32_1 = arith.constant 0 : i32
    return %arg0, %c0_i32, %c0_i32_0 : i32, i32, i32
  }
  func.func @transform_3(%arg0: i32) -> (i32, i32, i32) {
    %c0_i32 = arith.constant 0 : i32
    %c0_i32_0 = arith.constant 0 : i32
    %c0_i32_1 = arith.constant 0 : i32
    return %arg0, %c0_i32, %c0_i32_0 : i32, i32, i32
  }
}

module attributes {stable_mosaic.version = 11 : i64} {
  func.func @_conv_bn_kernel(%arg0: i32, %arg1: i32, %arg2: memref<48x128xbf16, #tpu.memory_space<vmem>>, %arg3: memref<32x48xbf16, #tpu.memory_space<vmem>>, %arg4: memref<32x1xf32, #tpu.memory_space<vmem>>, %arg5: memref<32x1xf32, #tpu.memory_space<vmem>>, %arg6: memref<1x32x128xf32, #tpu.memory_space<vmem>>) attributes {dimension_semantics = [#tpu.dimension_semantics<parallel>, #tpu.dimension_semantics<parallel>], iteration_bounds = array<i64: 2, 1>, scalar_prefetch = 0 : i64, scratch_operands = 0 : i64, tpu.core_type = #tpu.core_type<tc>, window_params = [{transform_indices = @transform_0, window_bounds = array<i64: 48, 128>}, {pipeline_mode = #tpu.pipeline_mode<synchronous>, transform_indices = @transform_1, window_bounds = array<i64: 32, 48>}, {pipeline_mode = #tpu.pipeline_mode<synchronous>, transform_indices = @transform_2, window_bounds = array<i64: 32, 1>}, {pipeline_mode = #tpu.pipeline_mode<synchronous>, transform_indices = @transform_3, window_bounds = array<i64: 32, 1>}, {transform_indices = @transform_4, window_bounds = array<i64: 1, 32, 128>}]} {
    %c0 = arith.constant 0 : index
    %c0_0 = arith.constant 0 : index
    %0 = vector.load %arg3[%c0, %c0_0] : memref<32x48xbf16, #tpu.memory_space<vmem>>, vector<32x48xbf16>
    %c0_1 = arith.constant 0 : index
    %c0_2 = arith.constant 0 : index
    %1 = vector.load %arg2[%c0_1, %c0_2] : memref<48x128xbf16, #tpu.memory_space<vmem>>, vector<48x128xbf16>
    %cst = arith.constant dense<0.000000e+00> : vector<32x128xf32>
    %2 = tpu.matmul %0, %1, %cst {dimension_numbers = #tpu.dot_dimension_numbers<[1], [0], [0], [1], [0, 0, 1, 1], [], []>} : vector<32x48xbf16>, vector<48x128xbf16>, vector<32x128xf32> -> vector<32x128xf32>
    %c0_3 = arith.constant 0 : index
    %c0_4 = arith.constant 0 : index
    %3 = vector.load %arg4[%c0_3, %c0_4] : memref<32x1xf32, #tpu.memory_space<vmem>>, vector<32x1xf32>
    %4 = vector.broadcast %3 : vector<32x1xf32> to vector<32x128xf32>
    %5 = arith.mulf %2, %4 : vector<32x128xf32>
    %c0_5 = arith.constant 0 : index
    %c0_6 = arith.constant 0 : index
    %6 = vector.load %arg5[%c0_5, %c0_6] : memref<32x1xf32, #tpu.memory_space<vmem>>, vector<32x1xf32>
    %7 = vector.broadcast %6 : vector<32x1xf32> to vector<32x128xf32>
    %8 = arith.addf %5, %7 : vector<32x128xf32>
    %c0_7 = arith.constant 0 : index
    %c0_8 = arith.constant 0 : index
    %c0_9 = arith.constant 0 : index
    %9 = vector.load %arg6[%c0_7, %c0_8, %c0_9] : memref<1x32x128xf32, #tpu.memory_space<vmem>>, vector<1x32x128xf32>
    %10 = vector.shape_cast %9 : vector<1x32x128xf32> to vector<32x128xf32>
    %11 = vector.shape_cast %8 : vector<32x128xf32> to vector<1x32x128xf32>
    tpu.vector_store %arg6[%c0_7, %c0_8, %c0_9], %11 {strides = array<i32>} : memref<1x32x128xf32, #tpu.memory_space<vmem>>, vector<1x32x128xf32>,
    return
  }
  func.func @transform_0(%arg0: i32, %arg1: i32) -> (i32, i32) {
    %c1_i32 = arith.constant 1 : i32
    %0 = arith.muli %arg0, %c1_i32 : i32
    %1 = arith.addi %0, %arg1 : i32
    %c0_i32 = arith.constant 0 : i32
    %c0_i32_0 = arith.constant 0 : i32
    return %c0_i32, %1 : i32, i32
  }
  func.func @transform_1(%arg0: i32, %arg1: i32) -> (i32, i32) {
    %c0_i32 = arith.constant 0 : i32
    %c0_i32_0 = arith.constant 0 : i32
    %c0_i32_1 = arith.constant 0 : i32
    return %c0_i32, %c0_i32_0 : i32, i32
  }
  func.func @transform_2(%arg0: i32, %arg1: i32) -> (i32, i32) {
    %c0_i32 = arith.constant 0 : i32
    %c0_i32_0 = arith.constant 0 : i32
    %c0_i32_1 = arith.constant 0 : i32
    return %c0_i32, %c0_i32_0 : i32, i32
  }
  func.func @transform_3(%arg0: i32, %arg1: i32) -> (i32, i32) {
    %c0_i32 = arith.constant 0 : i32
    %c0_i32_0 = arith.constant 0 : i32
    %c0_i32_1 = arith.constant 0 : i32
    return %c0_i32, %c0_i32_0 : i32, i32
  }
  func.func @transform_4(%arg0: i32, %arg1: i32) -> (i32, i32, i32) {
    %c0_i32 = arith.constant 0 : i32
    %c0_i32_0 = arith.constant 0 : i32
    return %arg0, %c0_i32, %arg1 : i32, i32, i32
  }
}

</mosaic_0001>

<bundles_post_ra>
// kernel: downsample.2
= control target key start
LH: loop header
LB: loop body
LE: loop exit
PB: predicated region body
PF: predicated region fallthrough
CT: control target
= control target key end

     0   :  { %s602_s12 = smov 0   ;;  %s604_s13 = smov 0   ;;  %s674_s0 = inlined_call_operand.vmem [shape: bf16[48,256], index: 0, kind: input, shape index: {}]   ;;  %s675_s1 = inlined_call_operand.vmem [shape: bf16[32,48], index: 1, kind: input, shape index: {}]   ;;  %s676_s2 = inlined_call_operand.vmem [shape: f32[2,32,1], index: 2, kind: output, shape index: {0}]   ;;  %s677_s3 = inlined_call_operand.vmem [shape: f32[2,32,1], index: 3, kind: output, shape index: {1}]  }
   0x1   :  { %s606_s14 = smov 0  }
   0x2 LB: > { %s618_s15 = sadd.s32 4294967295, %s580_s14   ;;  %s621_s16 = sadd.s32 1, %s580_s14   ;;  %s580_s14 = sphi %s606_s14, %s680_s14   ;;  %s576_s13 = sphi %s604_s13, %s679_s13   ;;  %s572_s12 = sphi %s602_s12, %s678_s12  }
   0x3   : > { %s18_s17 = ssub.s32 %s580_s14, %s621_s16  ;;  %s21_s18 = sadd.s32 1, %s576_s13 }
   0x4   : > { %p19_p0 = scmp.eq.s32.totalorder %s18_s17, 0  ;;  %p28_p1 = scmp.ne.s32.totalorder %s576_s13, %s572_s12 }
   0x5   : > { %p29_p2 = scmp.eq.s32.totalorder %s580_s14, 0  ;;  %p492_p4 = scmp.ge.s32.totalorder %s580_s14, 2 }
   0x6   : > { %s630_s19 = scalar_select %p19_p0, %s576_s13, %s21_s18  }
   0x7   : > { %p30_p3 = por %p29_p2, %p28_p1  ;;  %130 = sbr.rel (%p492_p4) target bundleno = 22 (0x16), region = 20 }
   0xe   : > { %133 = sbr.rel (!%p30_p3) target bundleno = 22 (0x16), region = 24  ;;  %s135_s20 = sand.u32 (%p30_p3), 1, %s576_s13  }
   0xf   : > { %s493_s21 = sshll.u32 (%p30_p3), %s580_s14, 2  ;;  %s527_s22 = smul.u32 (%p30_p3), 24, %s135_s20 }
  0x10   : > { %s139_s25 = scalar_lea.vmem (%p30_p3), %s674_s0, %s493_s21 }
  0x11   : > { %v155_v0 = vld [vmem:[%s139_s25] sm:$0xf] (%p30_p3)  ;;  %v157_v1 = vld [vmem:[%s139_s25 + $0x8] sm:$0xf] (%p30_p3)  ;;  %v159_v2 = vld [vmem:[%s139_s25 + $0x10] sm:$0xf] (%p30_p3) }
  0x12   : > { %v161_v3 = vld [vmem:[%s139_s25 + $0x18] sm:$0xf] (%p30_p3)  ;;  %v163_v4 = vld [vmem:[%s139_s25 + $0x20] sm:$0xf] (%p30_p3)  ;;  %s137_s26 = scalar_lea.vmem (%p30_p3), [#allocation2], %s527_s22 }
  0x13   : > { %156 = vst [vmem:[%s137_s26] sm:$0xf] (%p30_p3), %v155_v0  ;;  %158 = vst [vmem:[%s137_s26 + $0x4] sm:$0xf] (%p30_p3), %v157_v1  ;;  %v165_v5 = vld [vmem:[%s139_s25 + $0x28] sm:$0xf] (%p30_p3) }
  0x14   : > { %160 = vst [vmem:[%s137_s26 + $0x8] sm:$0xf] (%p30_p3), %v159_v2  ;;  %162 = vst [vmem:[%s137_s26 + $0xc] sm:$0xf] (%p30_p3), %v161_v3 }
  0x15   : > { %164 = vst [vmem:[%s137_s26 + $0x10] sm:$0xf] %v163_v4  ;;  %166 = vst [vmem:[%s137_s26 + $0x14] sm:$0xf] %v165_v5 }
  0x16 PF: > { %p494_p5 = scmp.ge.s32.totalorder %s580_s14, 1  ;;  %p200_p6 = scmp.lt.s32.totalorder %s580_s14, 3 }
  0x18   : > { %p201_p7 = pnand %p494_p5, %p200_p6 }
  0x19   : > { %s207_s27 = sand.u32 (!%p201_p7), 1, %s572_s12   ;;  %v556_v6 = vld [vmem:[%s675_s1] sm:$0xff] (!%p201_p7)   ;;  %vm284_vm0 = vcmask (!%p201_p7), 392192   ;;  %v557_v10 = vld [vmem:[%s675_s1 + $0x8] sm:$0xff] (!%p201_p7)   ;;  %v340_v11 = vlaneseq (!%p201_p7)  ;;  %s506_s7 = sshll.u32 (!%p201_p7), %s618_s15, 7  ;;  %vm374_vm8 = vcmask (!%p201_p7), 7168  }
  0x1a   : > { %204 = sbr.rel (%p201_p7) target bundleno = 412 (0x19c), region = 65  ;;  %523 = vmatprep.mubr.msk.bf16.mxu0 (!%p201_p7), %vm284_vm0, %v556_v6  ;;  %v343_v13 = vstv (!%p201_p7), %s506_s7  ;;  %p235_p8 = scmp.lt.s32.totalorder (!%p201_p7), %s618_s15, 1 }
  0x1b   : > { %s528_s30 = smul.u32 (!%p201_p7), 24, %s207_s27  ;;  %v341_v12 = vand.u32 (!%p201_p7), 127, %v340_v11 }
  0x1d   : > { %s209_s4 = scalar_lea.vmem (!%p201_p7), [#allocation2], %s528_s30  ;;  %v344_v14 = vadd.s32 (!%p201_p7), %v343_v13, %v341_v12 }
  0x1e   : > { %v553_v7 = vld [vmem:[%s209_s4] sm:$0xff] (!%p201_p7)   ;;  %v554_v8 = vld [vmem:[%s209_s4 + $0x8] sm:$0xff] (!%p201_p7)   ;;  %v555_v9 = vld [vmem:[%s209_s4 + $0x10] sm:$0xff] (!%p201_p7)  }
  0x1f   : > { %517 = vmatprep.subr.bf16.mxu0 (!%p201_p7), %v553_v7  ;;  %v346_v15 = vsub.s32 (!%p201_p7), 0, %v344_v14  ;;  %vm345_vm1 = vcmp.lt.s32.totalorder (!%p201_p7), %v344_v14, 0  ;;  %vm358_vm6 = vcmp.lt.s32.totalorder (!%p201_p7), %v344_v14, 256 }
  0x20   : > { %518 = vmatpush3.bf16.msra.mxu0 (!%p201_p7), %v553_v7 }
  0x21   : > { %519 = vmatprep.subr.bf16.mxu0 %v554_v8  ;;  %v507_v16 = vmin.u32 %v346_v15, %v344_v14  ;;  %s682_s15 = smov (!%p235_p8, %s618_s15), 1 }
  0x22   : > { %s510_s8 = sshll.u32 %s682_s15, 5 }
  0x23   : > { %v349_v17 = vand.u32 127, %v507_v16  ;;  %s239_s11 = scalar_lea.vmem %s676_s2, %s510_s8  ;;  %s244_s15 = scalar_lea.vmem %s677_s3, %s510_s8 }
  0x24   : > { %520 = vmatpush3.bf16.msra.mxu0 %v554_v8 }
  0x25   : > { %521 = vmatprep.subr.bf16.mxu0 %v555_v9  ;;  %v350_v18 = vsub.s32 0, %v349_v17 }
  0x27   : > { %v351_v19 = vsel %vm345_vm1, %v350_v18, %v349_v17 }
  0x28   : > { %522 = vmatpush3.bf16.msra.mxu0 %v555_v9  ;;  %vm352_vm2 = vcmp.ne.s32.totalorder %v351_v19, 0  ;;  %vm353_vm3 = vcmp.lt.s32.totalorder %v351_v19, 0  ;;  %v355_v20 = vadd.s32 128, %v351_v19 }
  0x29   : > { %vm354_vm4 = vmand %vm353_vm3, %vm352_vm2 }
  0x2a   : > { %v356_v21 = vsel %vm354_vm4, %v355_v20, %v351_v19 }
  0x2b   : > { %524 = vmatmul.mubr.msk.bf16.vlgmr.msra.gmra.mrb[0].mxu0 %vm284_vm0, %v557_v10  ;;  %vm357_vm5 = vcmp.lt.s32.totalorder %v356_v21, 64 }
  0x2c   : > { %vm359_vm7 = vmand %vm357_vm5, %vm358_vm6 }
  0xfe   : > { %v525_v22 = vpop.f32.mrb[0].mxu0 }
  0xff   : > { %v325_v23 = vpop.f32.mrb[1].mxu0  ;;  %v364_v24 = vsel %vm359_vm7, %v525_v22, 0.0 }
 0x100   : > { %370 = vadd.xlane.f32.xlu1 %v364_v24  ;;  %v526_v25 = vpop.f32.mrb[2].mxu0  ;;  %v362_v26 = vsel %vm359_vm7, %v325_v23, 0.0  ;;  %v381_v33 = vmul.f32 %v364_v24, %v364_v24 }
 0x101   : > { %366 = vadd.xlane.f32.xlu0 %v362_v26  ;;  %v328_v27 = vpop.f32.mrb[3].mxu0  ;;  %v365_v28 = vsel %vm359_vm7, %v526_v25, 0.0  ;;  %v379_v31 = vmul.f32 %v362_v26, %v362_v26 }
 0x102   : > { %v363_v29 = vsel %vm359_vm7, %v328_v27, 0.0  ;;  %v382_v32 = vmul.f32 %v365_v28, %v365_v28 }
 0x103   : > { %v380_v30 = vmul.f32 %v363_v29, %v363_v29 }
 0x104   : > { %372 = vadd.xlane.f32.xlu1 %v365_v28 }
 0x105   : > { %368 = vadd.xlane.f32.xlu0 %v363_v29 }
 0x108   : > { %385 = vadd.xlane.f32.xlu1 %v380_v30 }
 0x109   : > { %383 = vadd.xlane.f32.xlu0 %v379_v31 }
 0x10c   : > { %389 = vadd.xlane.f32.xlu1 %v382_v32 }
 0x10d   : > { %387 = vadd.xlane.f32.xlu0 %v381_v33 }
 0x18d   : > { %v371_v34 = vpop.xlane.xlu1 %370 }
 0x18e   : > { %377 = vst.msk [vmem:[%s239_s11 + $0x10] sm:$0xff] %vm374_vm8, %v371_v34  ;;  %v367_v35 = vpop.xlane.xlu0 %366 }
 0x18f   : > { %375 = vst.msk [vmem:[%s239_s11] sm:$0xff] %vm374_vm8, %v367_v35 }
 0x191   : > { %v373_v36 = vpop.xlane.xlu1 %372 }
 0x192   : > { %378 = vst.msk [vmem:[%s239_s11 + $0x18] sm:$0xff] %vm374_vm8, %v373_v36  ;;  %v369_v37 = vpop.xlane.xlu0 %368 }
 0x193   : > { %376 = vst.msk [vmem:[%s239_s11 + $0x8] sm:$0xff] %vm374_vm8, %v369_v37 }
 0x195   : > { %v386_v38 = vpop.xlane.xlu1 %385 }
 0x196   : > { %392 = vst.msk [vmem:[%s244_s15 + $0x8] sm:$0xff] %vm374_vm8, %v386_v38  ;;  %v384_v39 = vpop.xlane.xlu0 %383 }
 0x197   : > { %391 = vst.msk [vmem:[%s244_s15] sm:$0xff] %vm374_vm8, %v384_v39 }
 0x199   : > { %v390_v40 = vpop.xlane.xlu1 %389 }
 0x19a   : > { %394 = vst.msk [vmem:[%s244_s15 + $0x18] sm:$0xff] %vm374_vm8, %v390_v40  ;;  %v388_v41 = vpop.xlane.xlu0 %387 }
 0x19b   : > { %393 = vst.msk [vmem:[%s244_s15 + $0x10] sm:$0xff] %vm374_vm8, %v388_v41 }
 0x19c PF: > { %p11_p9 = scmp.ge.s32.totalorder %s621_s16, 4   ;;  %s678_s12 = smov %s576_s13 }
 0x19d   : > { %s679_s13 = smov %s630_s19  ;;  %s680_s14 = smov %s621_s16 }
 0x19e   :  { %13 = sbr.rel (!%p11_p9) target bundleno = 2 (0x2), region = 116 }

// kernel: downsample.3
= control target key start
LH: loop header
LB: loop body
LE: loop exit
PB: predicated region body
PF: predicated region fallthrough
CT: control target
= control target key end

     0   :  { %s671_s15 = smov 0   ;;  %s673_s16 = smov 0   ;;  %s769_s0 = inlined_call_operand.vmem [shape: bf16[48,256], index: 0, kind: input, shape index: {}]   ;;  %s770_s1 = inlined_call_operand.vmem [shape: bf16[32,48], index: 1, kind: input, shape index: {}]   ;;  %s771_s2 = inlined_call_operand.vmem [shape: f32[32,1], index: 2, kind: input, shape index: {}]   ;;  %s772_s3 = inlined_call_operand.vmem [shape: f32[32,1], index: 3, kind: input, shape index: {}]   ;;  %s773_s4 = inlined_call_operand.vmem [shape: f32[2,32,128], index: 4, kind: output, shape index: {}]  }
   0x1   :  { %s675_s17 = smov 0   ;;  %s677_s18 = smov 0  }
   0x2   :  { %s679_s19 = smov 0  }
   0x3 LB: > { %s26_s20 = sadd.s32 1, %s639_s18  ;;  %p42_p1 = scmp.ne.s32.totalorder %s631_s16, %s627_s15  ;;  %s643_s19 = sphi %s679_s19, %s14_s19   ;;  %s639_s18 = sphi %s677_s18, %s777_s18   ;;  %s635_s17 = sphi %s675_s17, %s776_s17   ;;  %s631_s16 = sphi %s673_s16, %s775_s16   ;;  %s627_s15 = sphi %s671_s15, %s774_s15  }
   0x4   : > { %p28_p0 = scmp.ge.s32.totalorder %s26_s20, 2  ;;  %p43_p2 = scmp.eq.s32.totalorder %s643_s19, 0 }
   0x5   : > { %s35_s22 = sadd.s32 1, %s631_s16  ;;  %p525_p5 = scmp.ge.s32.totalorder %s643_s19, 2 }
   0x6   : > { %s779_s20 = smov (%p28_p0, %s26_s20), 0  ;;  %p44_p3 = por %p43_p2, %p42_p1 }
   0x7   : > { %s32_s21 = ssub.s32 %s639_s18, %s779_s20  ;;  %168 = sbr.rel (%p525_p5) target bundleno = 22 (0x16), region = 28 }
   0x8   : > { %p33_p4 = scmp.eq.s32.totalorder %s32_s21, 0 }
   0xa   : > { %s706_s23 = scalar_select %p33_p4, %s631_s16, %s35_s22  }
   0xe   : > { %171 = sbr.rel (!%p44_p3) target bundleno = 22 (0x16), region = 32  ;;  %s173_s24 = sand.u32 (%p44_p3), 1, %s631_s16  }
   0xf   : > { %s526_s25 = sshll.u32 (%p44_p3), %s639_s18, 2  ;;  %s555_s26 = smul.u32 (%p44_p3), 24, %s173_s24 }
  0x10   : > { %s178_s29 = scalar_lea.vmem (%p44_p3), %s769_s0, %s526_s25 }
  0x11   : > { %v194_v0 = vld [vmem:[%s178_s29] sm:$0xf] (%p44_p3)  ;;  %v196_v1 = vld [vmem:[%s178_s29 + $0x8] sm:$0xf] (%p44_p3)  ;;  %v198_v2 = vld [vmem:[%s178_s29 + $0x10] sm:$0xf] (%p44_p3) }
  0x12   : > { %v200_v3 = vld [vmem:[%s178_s29 + $0x18] sm:$0xf] (%p44_p3)  ;;  %v202_v4 = vld [vmem:[%s178_s29 + $0x20] sm:$0xf] (%p44_p3)  ;;  %s175_s30 = scalar_lea.vmem (%p44_p3), [#allocation2], %s555_s26 }
  0x13   : > { %195 = vst [vmem:[%s175_s30] sm:$0xf] (%p44_p3), %v194_v0  ;;  %197 = vst [vmem:[%s175_s30 + $0x4] sm:$0xf] (%p44_p3), %v196_v1  ;;  %v204_v5 = vld [vmem:[%s178_s29 + $0x28] sm:$0xf] (%p44_p3) }
  0x14   : > { %199 = vst [vmem:[%s175_s30 + $0x8] sm:$0xf] (%p44_p3), %v198_v2  ;;  %201 = vst [vmem:[%s175_s30 + $0xc] sm:$0xf] (%p44_p3), %v200_v3 }
  0x15   : > { %203 = vst [vmem:[%s175_s30 + $0x10] sm:$0xf] %v202_v4  ;;  %205 = vst [vmem:[%s175_s30 + $0x14] sm:$0xf] %v204_v5 }
  0x16 PF: > { %p527_p6 = scmp.ge.s32.totalorder %s643_s19, 1  ;;  %p239_p7 = scmp.lt.s32.totalorder %s643_s19, 3 }
  0x18   : > { %p240_p8 = pnand %p527_p6, %p239_p7 }
  0x19   : > { %s246_s5 = sand.u32 (!%p240_p8), 1, %s627_s15   ;;  %v603_v6 = vld [vmem:[%s770_s1] sm:$0xff] (!%p240_p8)   ;;  %vm322_vm0 = vcmask (!%p240_p8), 392192   ;;  %v380_v7 = vld [vmem:[%s771_s2 + $0x10] sm:$0xff] (!%p240_p8)  ;;  %v645_v9 = vmov (!%p240_p8), 0   ;;  %v381_v10 = vld [vmem:[%s771_s2 + $0x18] sm:$0xff] (!%p240_p8) }
  0x1a   : > { %243 = sbr.rel (%p240_p8) target bundleno = 263 (0x107), region = 73  ;;  %551 = vmatprep.mubr.msk.bf16.mxu0 (!%p240_p8), %vm322_vm0, %v603_v6  ;;  %v378_v8 = vld [vmem:[%s771_s2] sm:$0xff] (!%p240_p8)  ;;  %599 = vset.pattern.permute.xlu1 (!%p240_p8), %v645_v9  ;;  %v379_v13 = vld [vmem:[%s771_s2 + $0x8] sm:$0xff] (!%p240_p8)  ;;  %v409_v17 = vld [vmem:[%s772_s3 + $0x18] sm:$0xff] (!%p240_p8)  ;;  %p275_p9 = scmp.lt.s32.totalorder (!%p240_p8), %s635_s17, 1 }
  0x1b   : > { %s556_s8 = smul.u32 (!%p240_p8), 24, %s246_s5  ;;  %598 = vset.pattern.permute.xlu0 (!%p240_p8), %v645_v9  ;;  %394 = vperm.xlu1 (!%p240_p8), %599, %v380_v7   ;;  %v407_v15 = vld [vmem:[%s772_s3 + $0x8] sm:$0xff] (!%p240_p8)  ;;  %v406_v16 = vld [vmem:[%s772_s3] sm:$0xff] (!%p240_p8)  ;;  %v408_v19 = vld [vmem:[%s772_s3 + $0x10] sm:$0xff] (!%p240_p8) }
  0x1c   : > { %384 = vperm.xlu0 (!%p240_p8), %598, %v378_v8   ;;  %v604_v18 = vld [vmem:[%s770_s1 + $0x8] sm:$0xff] (!%p240_p8)  }
  0x1d   : > { %s248_s15 = scalar_lea.vmem (!%p240_p8), [#allocation2], %s556_s8 }
  0x1e   : > { %v600_v11 = vld [vmem:[%s248_s15] sm:$0xff] (!%p240_p8)   ;;  %v601_v12 = vld [vmem:[%s248_s15 + $0x8] sm:$0xff] (!%p240_p8)   ;;  %v602_v14 = vld [vmem:[%s248_s15 + $0x10] sm:$0xff] (!%p240_p8)  }
  0x1f   : > { %545 = vmatprep.subr.bf16.mxu0 (!%p240_p8), %v600_v11  ;;  %399 = vperm.xlu1 (!%p240_p8), %599, %v381_v10  }
  0x20   : > { %546 = vmatpush3.bf16.msra.mxu0 (!%p240_p8), %v600_v11  ;;  %389 = vperm.xlu0 (!%p240_p8), %598, %v379_v13  }
  0x21   : > { %547 = vmatprep.subr.bf16.mxu0 %v601_v12  ;;  %s781_s17 = smov (!%p275_p9, %s635_s17), 1 }
  0x22   : > { %s539_s8 = sshll.u32 %s781_s17, 5 }
  0x23   : > { %417 = vperm.xlu1 %599, %v407_v15   ;;  %s282_s11 = scalar_lea.vmem %s773_s4, %s539_s8 }
  0x24   : > { %548 = vmatpush3.bf16.msra.mxu0 %v601_v12  ;;  %412 = vperm.xlu0 %598, %v406_v16  }
  0x25   : > { %549 = vmatprep.subr.bf16.mxu0 %v602_v14 }
  0x27   : > { %427 = vperm.xlu1 %599, %v409_v17  }
  0x28   : > { %550 = vmatpush3.bf16.msra.mxu0 %v602_v14  ;;  %422 = vperm.xlu0 %598, %v408_v19  }
  0x2b   : > { %552 = vmatmul.mubr.msk.bf16.vlgmr.msra.gmra.mrb[0].mxu0 %vm322_vm0, %v604_v18 }
  0x9a   : > { %v395_v21 = vpop.permute.xlu1 %394 }
  0x9b   : > { %v385_v20 = vpop.permute.xlu0 %384 }
  0x9e   : > { %v400_v23 = vpop.permute.xlu1 %399 }
  0x9f   : > { %v390_v22 = vpop.permute.xlu0 %389 }
  0xa2   : > { %v418_v25 = vpop.permute.xlu1 %417 }
  0xa3   : > { %v413_v24 = vpop.permute.xlu0 %412 }
  0xa6   : > { %v428_v35 = vpop.permute.xlu1 %427 }
  0xa7   : > { %v423_v29 = vpop.permute.xlu0 %422 }
  0xfe   : > { %v553_v26 = vpop.f32.mrb[0].mxu0 }
  0xff   : > { %v404_v27 = vmul.f32 %v553_v26, %v395_v21  ;;  %v363_v28 = vpop.f32.mrb[1].mxu0 }
 0x100   : > { %v402_v30 = vmul.f32 %v385_v20, %v363_v28  ;;  %v554_v31 = vpop.f32.mrb[2].mxu0 }
 0x101   : > { %v432_v32 = vadd.f32 %v423_v29, %v404_v27  ;;  %v405_v33 = vmul.f32 %v554_v31, %v400_v23  ;;  %v366_v34 = vpop.f32.mrb[3].mxu0 }
 0x102   : > { %v430_v36 = vadd.f32 %v413_v24, %v402_v30  ;;  %v403_v37 = vmul.f32 %v390_v22, %v366_v34 }
 0x103   : > { %436 = vst [vmem:[%s282_s11 + $0x10] sm:$0xff] %v432_v32  ;;  %v433_v38 = vadd.f32 %v428_v35, %v405_v33 }
 0x104   : > { %434 = vst [vmem:[%s282_s11] sm:$0xff] %v430_v36  ;;  %v431_v39 = vadd.f32 %v418_v25, %v403_v37 }
 0x105   : > { %437 = vst [vmem:[%s282_s11 + $0x18] sm:$0xff] %v433_v38 }
 0x106   : > { %435 = vst [vmem:[%s282_s11 + $0x8] sm:$0xff] %v431_v39 }
 0x107 PF: > { %s14_s19 = sadd.s32 1, %s643_s19   ;;  %s774_s15 = smov %s631_s16 }
 0x108   : > { %p11_p10 = scmp.ge.s32.totalorder %s14_s19, 4   ;;  %s775_s16 = smov %s706_s23 }
 0x109   : > { %s776_s17 = smov %s639_s18  ;;  %s777_s18 = smov %s779_s20 }
 0x10a   :  { %13 = sbr.rel (!%p11_p10) target bundleno = 3 (0x3), region = 112 }

</bundles_post_ra>
